<compile_context>
chip_gen: v5e
topology: v5e:2x2
jax: 0.10.0
libtpu: 0.0.40
codegen_flags: <defaults>
</compile_context>

<pallas_src>
import math

import jax
import jax.numpy as jnp
import numpy as np
from jax import lax
from jax.experimental import pallas as pl
from jax.experimental.pallas import tpu as pltpu

_LANES = 128


def _cdiv(a, b):
    return -(-a // b)


def _lcm(a, b):
    return a * b // math.gcd(a, b)


def _round_up(x, m):
    return _cdiv(x, m) * m


def _default_num_cores():
    # Single TensorCore per chip on v2-v6; two on v7x.
    try:
        kind = jax.devices()[0].device_kind.lower()
    except Exception:
        return 1
    return 2 if "v7" in kind else 1


def _make_aucm_kernel(tile_rows, p8, rows_arr, use_mask):
    """Kernel closure.  tile_rows is a multiple of p8; p8 a multiple of the
    sublane packing of both input dtypes, so all reshapes are layout-free."""
    g = tile_rows // p8

    def kernel(coef_ref, yp_ref, yt_ref, out_ref):
        r = pl.program_id(1)                     # reduction (batch-tile) axis

        @pl.when(r == 0)
        def _init():
            out_ref[...] = jnp.zeros_like(out_ref)

        # Predictions: native-dtype DMA, f32 math.  Labels: native dtype, no cast.
        yp = yp_ref[...].astype(jnp.float32).reshape(g, p8, _LANES)
        yt = yt_ref[...].reshape(g, p8, _LANES)

        pos = yt == 1                            # exact-equality masks (booleans)
        neg = yt == 0

        # Per-lane, per-row-phase Horner coefficients (broadcast over g).
        c2 = jnp.where(pos, coef_ref[0], jnp.where(neg, coef_ref[3], 0.0))
        c1 = jnp.where(pos, coef_ref[1], jnp.where(neg, coef_ref[4], 0.0))
        c0 = jnp.where(pos, coef_ref[2], jnp.where(neg, coef_ref[5], 0.0))
        contrib = (c2 * yp + c1) * yp + c0       # (g, p8, 128) float32

        if not use_mask:
            out_ref[...] += contrib.reshape(-1, 8, _LANES).sum(axis=0)
        else:
            # Global packed-row index of this tile's first row.
            row_start = (pl.program_id(0) * pl.num_programs(1) + r) * tile_rows
            limit = rows_arr - row_start         # number of valid rows in tile

            @pl.when(limit >= tile_rows)
            def _full_tile():
                out_ref[...] += contrib.reshape(-1, 8, _LANES).sum(axis=0)

            @pl.when(limit < tile_rows)
            def _ragged_tile():
                row = (lax.broadcasted_iota(jnp.int32, (g, p8, _LANES), 0) * p8
                       + lax.broadcasted_iota(jnp.int32, (g, p8, _LANES), 1))
                safe = jnp.where(row < limit, contrib, 0.0)
                out_ref[...] += safe.reshape(-1, 8, _LANES).sum(axis=0)

    return kernel


def aucm_multilabel_loss(y_pred, y_true, p, a, b, alpha, *,
                         tile_rows=None, num_cores=None, max_tile_rows=2048):
    """Total AUCM multi-label loss (scalar, float32).

    y_pred, y_true : (N, C) arrays (float32 / bfloat16; labels are 0/1).
    p, a, b, alpha : (C,) per-class parameters (imratio, a, b, alpha).
    """
    n, c = y_pred.shape
    assert y_true.shape == (n, c), "y_pred / y_true shape mismatch"
    if num_cores is None:
        num_cores = _default_num_cores()
    num_cores = max(1, int(num_cores))

    it_p = jnp.dtype(y_pred.dtype).itemsize
    it_t = jnp.dtype(y_true.dtype).itemsize
    sub = max(8 * (4 // max(1, it_p)), 8 * (4 // max(1, it_t)), 8)

    # Row phase period of the class pattern in a 128-lane packed layout,
    # rounded up so every phase slab spans whole vregs for both dtypes.
    period = c // math.gcd(c, _LANES)
    p8 = _lcm(period, sub)
    if p8 > 2048:
        # TODO(synk): fall back to a row-tiled (tile_n, C) layout for
        # pathological class counts with a huge phase period.
        raise NotImplementedError("num_classes with phase period > 2048")

    # ---- per-class parameters -> Horner coefficient phase table ------------
    pf = jnp.asarray(p, jnp.float32).reshape(c)
    af = jnp.asarray(a, jnp.float32).reshape(c)
    bf = jnp.asarray(b, jnp.float32).reshape(c)
    alf = jnp.asarray(alpha, jnp.float32).reshape(c)
    omp = 1.0 - pf
    coef_cls = jnp.stack(
        [omp,                                   # c2 | yt == 1
         -2.0 * omp * af - 2.0 * alf * omp,     # c1 | yt == 1
         omp * af * af,                         # c0 | yt == 1
         pf,                                    # c2 | yt == 0
         -2.0 * pf * bf + 2.0 * alf * pf,       # c1 | yt == 0
         pf * bf * bf],                         # c0 | yt == 0
        axis=0)                                 # (6, C)
    lane_cls = (np.arange(p8)[:, None] * _LANES
                + np.arange(_LANES)[None, :]) % c
    coef_tab = jnp.take(coef_cls, jnp.asarray(lane_cls, np.int32), axis=1)
    # coef_tab: (6, p8, 128), loaded once (constant index map) and VMEM-resident.

    # ---- tiling -------------------------------------------------------------
    elems = n * c
    rows_valid = _cdiv(elems, _LANES)
    per_core = _cdiv(rows_valid, num_cores)
    if tile_rows is None:
        steps = max(1, _cdiv(per_core, max_tile_rows))
        tile_rows = _cdiv(per_core, steps)
    tile_rows = max(p8, _round_up(int(tile_rows), p8))
    tile_rows = min(tile_rows, _round_up(per_core, p8))
    inner_steps = max(1, _cdiv(per_core, tile_rows))
    # Never let a core's first tile start fully out of bounds.
    if num_cores > 1 and (num_cores * inner_steps - 1) * tile_rows >= rows_valid:
        num_cores = 1
        inner_steps = max(1, _cdiv(rows_valid, tile_rows))
    coverage_rows = num_cores * inner_steps * tile_rows

    # ---- pack the data lane-dense; pad only when unavoidable ---------------
    yp_flat = y_pred.reshape(elems)
    yt_flat = y_true.reshape(elems)
    pad_to = None
    if elems % _LANES != 0:
        pad_to = rows_valid * _LANES            # minimal pad so reshape is legal
    if coverage_rows > rows_valid and rows_valid < tile_rows:
        pad_to = coverage_rows * _LANES         # tiny input: pad fully, skip mask
    if pad_to is not None:
        extra = pad_to - elems
        # Single fused pad per array; yt = -1 matches neither branch -> zero.
        yp_flat = jnp.pad(yp_flat, (0, extra))
        yt_flat = jnp.pad(yt_flat, (0, extra), constant_values=-1)
        rows_arr = pad_to // _LANES
    else:
        rows_arr = rows_valid
    use_mask = coverage_rows > rows_arr

    yp2 = yp_flat.reshape(rows_arr, _LANES)
    yt2 = yt_flat.reshape(rows_arr, _LANES)

    grid = (num_cores, inner_steps)
    data_spec = pl.BlockSpec((tile_rows, _LANES),
                             lambda cc, r: (cc * inner_steps + r, 0))

    out = pl.pallas_call(
        _make_aucm_kernel(tile_rows, p8, rows_arr, use_mask),
        out_shape=jax.ShapeDtypeStruct((num_cores * 8, _LANES), jnp.float32),
        grid=grid,
        in_specs=[pl.BlockSpec((6, p8, _LANES), lambda cc, r: (0, 0, 0)),
                  data_spec, data_spec],
        out_specs=pl.BlockSpec((8, _LANES), lambda cc, r: (cc, 0)),
        compiler_params=pltpu.CompilerParams(
            dimension_semantics=("parallel", "arbitrary")),
    )(coef_tab, yp2, yt2)

    # Wrapper epilogue: tiny (num_cores*8, 128) reduce, mean scaling, and the
    # data-independent constant term (moved out of the kernel).
    const_sum = jnp.sum(2.0 * alf * pf * omp - pf * omp * alf * alf)
    return jnp.sum(out) * (1.0 / float(n)) + const_sum


def aucm_multilabel_ref(y_pred, y_true, p, a, b, alpha):
    """Pure-JAX reference: literal transcription of the PyTorch forward."""
    y_pred = y_pred.astype(jnp.float32)
    y_true = y_true.astype(jnp.float32)
    p = jnp.asarray(p, jnp.float32)
    a = jnp.asarray(a, jnp.float32)
    b = jnp.asarray(b, jnp.float32)
    alpha = jnp.asarray(alpha, jnp.float32)
    total = 0.0
    for idx in range(y_pred.shape[1]):
        yp = y_pred[:, idx:idx + 1]
        yt = y_true[:, idx:idx + 1]
        pos = (yt == 1.0).astype(jnp.float32)
        neg = (yt == 0.0).astype(jnp.float32)
        loss = ((1 - p[idx]) * jnp.mean((yp - a[idx]) ** 2 * pos)
                + p[idx] * jnp.mean((yp - b[idx]) ** 2 * neg)
                + 2 * alpha[idx] * (p[idx] * (1 - p[idx])
                                    + jnp.mean(p[idx] * yp * neg
                                               - (1 - p[idx]) * yp * pos))
                - p[idx] * (1 - p[idx]) * alpha[idx] ** 2)
        total = total + loss
    return total


if __name__ == "__main__":
    key = jax.random.PRNGKey(0)
    k1, k2, k3, k4 = jax.random.split(key, 4)

    def check(name, got, want, rtol=2e-4, atol=1e-4):
        got = np.asarray(jax.block_until_ready(got))
        want = np.asarray(jax.block_until_ready(want))
        assert np.allclose(got, want, rtol=rtol, atol=atol), (name, got, want)

    # Module default: num_classes = 10, imratio = [0.1] * 10.
    C = 10
    p = jnp.full((C,), 0.1, dtype=jnp.float32)
    a = 0.02 * jnp.arange(C, dtype=jnp.float32)
    b = 0.01 * jnp.arange(C, dtype=jnp.float32)
    alpha = 0.05 * jnp.arange(C, dtype=jnp.float32)

    # --- Case 1: small batch, C = 10 (tiny-input fused-pad path) ------------
    N1 = 64
    yp1 = jax.random.normal(k1, (N1, C), dtype=jnp.float32)
    yt1 = jax.random.bernoulli(k2, 0.2, (N1, C)).astype(jnp.float32)
    check("c10_small",
          aucm_multilabel_loss(yp1, yt1, p, a, b, alpha),
          aucm_multilabel_ref(yp1, yt1, p, a, b, alpha))

    # --- Case 2: aligned batch, C = 10 (zero-copy phase-table path) ---------
    N2 = 1024
    yp2 = jax.random.normal(k3, (N2, C), dtype=jnp.float32)
    yt2 = jax.random.bernoulli(k4, 0.3, (N2, C)).astype(jnp.float32)
    want2 = aucm_multilabel_ref(yp2, yt2, p, a, b, alpha)
    check("c10_aligned",
          aucm_multilabel_loss(yp2, yt2, p, a, b, alpha), want2)
    check("c10_two_core_grid",
          aucm_multilabel_loss(yp2, yt2, p, a, b, alpha, num_cores=2), want2)

    # --- Case 3: ragged grid + in-kernel row mask (C = 16, N = 104) ---------
    N3, C3 = 104, 16
    p3 = jnp.linspace(0.05, 0.40, C3, dtype=jnp.float32)
    a3 = 0.01 * jnp.arange(C3, dtype=jnp.float32)
    b3 = 0.02 * jnp.arange(C3, dtype=jnp.float32)
    al3 = 0.03 * jnp.arange(C3, dtype=jnp.float32)
    yp3 = jax.random.normal(k1, (N3, C3), dtype=jnp.float32)
    yt3 = jax.random.bernoulli(k2, 0.25, (N3, C3)).astype(jnp.float32)
    check("c16_ragged_mask",
          aucm_multilabel_loss(yp3, yt3, p3, a3, b3, al3,
                               tile_rows=8, num_cores=1),
          aucm_multilabel_ref(yp3, yt3, p3, a3, b3, al3))

    # --- Case 4: bf16 inputs (native-dtype DMA, label compare in bf16) ------
    N4, C4 = 256, 8
    p4 = jnp.linspace(0.05, 0.40, C4, dtype=jnp.float32)
    a4 = 0.02 * jnp.arange(C4, dtype=jnp.float32)
    b4 = 0.01 * jnp.arange(C4, dtype=jnp.float32)
    al4 = 0.04 * jnp.arange(C4, dtype=jnp.float32)
    yp4 = jax.random.normal(k3, (N4, C4), dtype=jnp.float32).astype(jnp.bfloat16)
    yt4 = jax.random.bernoulli(k4, 0.3, (N4, C4)).astype(jnp.bfloat16)
    check("c8_bf16",
          aucm_multilabel_loss(yp4, yt4, p4, a4, b4, al4),
          aucm_multilabel_ref(yp4, yt4, p4, a4, b4, al4),
          rtol=5e-4, atol=5e-4)

    # --- Case 5: bf16, misaligned N*C (single fused pad path) ---------------
    N5 = 100
    yp5 = jax.random.normal(k1, (N5, C), dtype=jnp.float32).astype(jnp.bfloat16)
    yt5 = jax.random.bernoulli(k2, 0.2, (N5, C)).astype(jnp.bfloat16)
    check("c10_bf16_misaligned",
          aucm_multilabel_loss(yp5, yt5, p, a, b, alpha),
          aucm_multilabel_ref(yp5, yt5, p, a, b, alpha),
          rtol=5e-4, atol=5e-4)

    print("KERNEL_OK")
</pallas_src>

<mosaic_0001>
module attributes {stable_mosaic.version = 11 : i64} {
  func.func @kernel(%arg0: i32, %arg1: i32, %arg2: memref<6x40x128xf32, #tpu.memory_space<vmem>>, %arg3: memref<40x128xf32, #tpu.memory_space<vmem>>, %arg4: memref<40x128xf32, #tpu.memory_space<vmem>>, %arg5: memref<8x128xf32, #tpu.memory_space<vmem>>) attributes {dimension_semantics = [#tpu.dimension_semantics<parallel>, #tpu.dimension_semantics<arbitrary>], iteration_bounds = array<i64: 1, 1>, scalar_prefetch = 0 : i64, scratch_operands = 0 : i64, tpu.core_type = #tpu.core_type<tc>, window_params = [{pipeline_mode = #tpu.pipeline_mode<synchronous>, transform_indices = @transform_0, window_bounds = array<i64: 6, 40, 128>}, {transform_indices = @transform_1, window_bounds = array<i64: 40, 128>}, {transform_indices = @transform_2, window_bounds = array<i64: 40, 128>}, {transform_indices = @transform_3, window_bounds = array<i64: 8, 128>}]} {
    %c0_i32 = arith.constant 0 : i32
    %0 = arith.cmpi eq, %arg1, %c0_i32 : i32
    %1 = arith.extui %0 : i1 to i32
    %c0_i32_0 = arith.constant 0 : i32
    %2 = arith.cmpi ne, %1, %c0_i32_0 : i32
    scf.if %2 {
      %cst_26 = arith.constant 0.000000e+00 : f32
      %47 = vector.broadcast %cst_26 : f32 to vector<8x128xf32>
      %c0_27 = arith.constant 0 : index
      %c0_28 = arith.constant 0 : index
      %48 = vector.load %arg5[%c0_27, %c0_28] : memref<8x128xf32, #tpu.memory_space<vmem>>, vector<8x128xf32>
      tpu.vector_store %arg5[%c0_27, %c0_28], %47 {strides = array<i32>} : memref<8x128xf32, #tpu.memory_space<vmem>>, vector<8x128xf32>,
    } else {
    }
    %c0 = arith.constant 0 : index
    %c0_1 = arith.constant 0 : index
    %3 = vector.load %arg3[%c0, %c0_1] : memref<40x128xf32, #tpu.memory_space<vmem>>, vector<40x128xf32>
    %4 = vector.shape_cast %3 : vector<40x128xf32> to vector<1x40x128xf32>
    %c0_2 = arith.constant 0 : index
    %c0_3 = arith.constant 0 : index
    %5 = vector.load %arg4[%c0_2, %c0_3] : memref<40x128xf32, #tpu.memory_space<vmem>>, vector<40x128xf32>
    %6 = vector.shape_cast %5 : vector<40x128xf32> to vector<1x40x128xf32>
    %cst = arith.constant 1.000000e+00 : f32
    %7 = vector.broadcast %cst : f32 to vector<1x40x128xf32>
    %8 = arith.cmpf oeq, %6, %7 : vector<1x40x128xf32>
    %cst_4 = arith.constant 0.000000e+00 : f32
    %9 = vector.broadcast %cst_4 : f32 to vector<1x40x128xf32>
    %10 = arith.cmpf oeq, %6, %9 : vector<1x40x128xf32>
    %c0_5 = arith.constant 0 : index
    %c0_6 = arith.constant 0 : index
    %c0_7 = arith.constant 0 : index
    %11 = vector.load %arg2[%c0_5, %c0_6, %c0_7] : memref<6x40x128xf32, #tpu.memory_space<vmem>>, vector<1x40x128xf32>
    %12 = vector.shape_cast %11 : vector<1x40x128xf32> to vector<40x128xf32>
    %c3 = arith.constant 3 : index
    %c0_8 = arith.constant 0 : index
    %c0_9 = arith.constant 0 : index
    %13 = vector.load %arg2[%c3, %c0_8, %c0_9] : memref<6x40x128xf32, #tpu.memory_space<vmem>>, vector<1x40x128xf32>
    %14 = vector.shape_cast %13 : vector<1x40x128xf32> to vector<40x128xf32>
    %cst_10 = arith.constant 0.000000e+00 : f32
    %15 = vector.shape_cast %14 : vector<40x128xf32> to vector<1x40x128xf32>
    %16 = vector.broadcast %cst_10 : f32 to vector<1x40x128xf32>
    %17 = arith.select %10, %15, %16 : vector<1x40x128xi1>, vector<1x40x128xf32>
    %18 = vector.shape_cast %12 : vector<40x128xf32> to vector<1x40x128xf32>
    %19 = arith.select %8, %18, %17 : vector<1x40x128xi1>, vector<1x40x128xf32>
    %c1 = arith.constant 1 : index
    %c0_11 = arith.constant 0 : index
    %c0_12 = arith.constant 0 : index
    %20 = vector.load %arg2[%c1, %c0_11, %c0_12] : memref<6x40x128xf32, #tpu.memory_space<vmem>>, vector<1x40x128xf32>
    %21 = vector.shape_cast %20 : vector<1x40x128xf32> to vector<40x128xf32>
    %c4 = arith.constant 4 : index
    %c0_13 = arith.constant 0 : index
    %c0_14 = arith.constant 0 : index
    %22 = vector.load %arg2[%c4, %c0_13, %c0_14] : memref<6x40x128xf32, #tpu.memory_space<vmem>>, vector<1x40x128xf32>
    %23 = vector.shape_cast %22 : vector<1x40x128xf32> to vector<40x128xf32>
    %cst_15 = arith.constant 0.000000e+00 : f32
    %24 = vector.shape_cast %23 : vector<40x128xf32> to vector<1x40x128xf32>
    %25 = vector.broadcast %cst_15 : f32 to vector<1x40x128xf32>
    %26 = arith.select %10, %24, %25 : vector<1x40x128xi1>, vector<1x40x128xf32>
    %27 = vector.shape_cast %21 : vector<40x128xf32> to vector<1x40x128xf32>
    %28 = arith.select %8, %27, %26 : vector<1x40x128xi1>, vector<1x40x128xf32>
    %c2 = arith.constant 2 : index
    %c0_16 = arith.constant 0 : index
    %c0_17 = arith.constant 0 : index
    %29 = vector.load %arg2[%c2, %c0_16, %c0_17] : memref<6x40x128xf32, #tpu.memory_space<vmem>>, vector<1x40x128xf32>
    %30 = vector.shape_cast %29 : vector<1x40x128xf32> to vector<40x128xf32>
    %c5 = arith.constant 5 : index
    %c0_18 = arith.constant 0 : index
    %c0_19 = arith.constant 0 : index
    %31 = vector.load %arg2[%c5, %c0_18, %c0_19] : memref<6x40x128xf32, #tpu.memory_space<vmem>>, vector<1x40x128xf32>
    %32 = vector.shape_cast %31 : vector<1x40x128xf32> to vector<40x128xf32>
    %cst_20 = arith.constant 0.000000e+00 : f32
    %33 = vector.shape_cast %32 : vector<40x128xf32> to vector<1x40x128xf32>
    %34 = vector.broadcast %cst_20 : f32 to vector<1x40x128xf32>
    %35 = arith.select %10, %33, %34 : vector<1x40x128xi1>, vector<1x40x128xf32>
    %36 = vector.shape_cast %30 : vector<40x128xf32> to vector<1x40x128xf32>
    %37 = arith.select %8, %36, %35 : vector<1x40x128xi1>, vector<1x40x128xf32>
    %38 = arith.mulf %19, %4 : vector<1x40x128xf32>
    %39 = arith.addf %38, %28 : vector<1x40x128xf32>
    %40 = arith.mulf %39, %4 : vector<1x40x128xf32>
    %41 = arith.addf %40, %37 : vector<1x40x128xf32>
    %c0_21 = arith.constant 0 : index
    %c0_22 = arith.constant 0 : index
    %42 = vector.load %arg5[%c0_21, %c0_22] : memref<8x128xf32, #tpu.memory_space<vmem>>, vector<8x128xf32>
    %43 = vector.shape_cast %41 : vector<1x40x128xf32> to vector<5x8x128xf32>
    %cst_23 = arith.constant dense<0.000000e+00> : vector<8x128xf32>
    %44 = vector.multi_reduction <add>, %43, %cst_23 [0] : vector<5x8x128xf32> to vector<8x128xf32>
    %45 = arith.addf %42, %44 : vector<8x128xf32>
    %c0_24 = arith.constant 0 : index
    %c0_25 = arith.constant 0 : index
    %46 = vector.load %arg5[%c0_24, %c0_25] : memref<8x128xf32, #tpu.memory_space<vmem>>, vector<8x128xf32>
    tpu.vector_store %arg5[%c0_24, %c0_25], %45 {strides = array<i32>} : memref<8x128xf32, #tpu.memory_space<vmem>>, vector<8x128xf32>,
    return
  }
  func.func @transform_0(%arg0: i32, %arg1: i32) -> (i32, i32, i32) {
    %c0_i32 = arith.constant 0 : i32
    %c0_i32_0 = arith.constant 0 : i32
    %c0_i32_1 = arith.constant 0 : i32
    %c0_i32_2 = arith.constant 0 : i32
    return %c0_i32, %c0_i32_0, %c0_i32_1 : i32, i32, i32
  }
  func.func @transform_1(%arg0: i32, %arg1: i32) -> (i32, i32) {
    %c1_i32 = arith.constant 1 : i32
    %0 = arith.muli %arg0, %c1_i32 : i32
    %1 = arith.addi %0, %arg1 : i32
    %c0_i32 = arith.constant 0 : i32
    %c0_i32_0 = arith.constant 0 : i32
    return %1, %c0_i32 : i32, i32
  }
  func.func @transform_2(%arg0: i32, %arg1: i32) -> (i32, i32) {
    %c1_i32 = arith.constant 1 : i32
    %0 = arith.muli %arg0, %c1_i32 : i32
    %1 = arith.addi %0, %arg1 : i32
    %c0_i32 = arith.constant 0 : i32
    %c0_i32_0 = arith.constant 0 : i32
    return %1, %c0_i32 : i32, i32
  }
  func.func @transform_3(%arg0: i32, %arg1: i32) -> (i32, i32) {
    %c0_i32 = arith.constant 0 : i32
    %c0_i32_0 = arith.constant 0 : i32
    return %arg0, %c0_i32 : i32, i32
  }
}

</mosaic_0001>

<bundles_post_ra>
// kernel: tpu_custom_call.1
= control target key start
LH: loop header
LB: loop body
LE: loop exit
PB: predicated region body
PF: predicated region fallthrough
CT: control target
= control target key end

     0   :  { %8 = vsyncpa [#allocation3], 0  ;;  %s456_s0 = inlined_call_operand.hbm [shape: f32[6,40,128], index: 0, kind: input, shape index: {}]   ;;  %s457_s1 = inlined_call_operand.hbm [shape: f32[40,128], index: 1, kind: input, shape index: {}]   ;;  %s458_s2 = inlined_call_operand.hbm [shape: f32[40,128], index: 2, kind: input, shape index: {}]   ;;  %s459_s3 = inlined_call_operand.hbm [shape: f32[8,128], index: 3, kind: output, shape index: {}]  }
   0x1   :  { %9 = vsyncpa [#allocation6], 0 }
   0x2   :  { %10 = vsyncpa [#allocation4], 0  ;;  %s32_s14 = sshll.u32 %s457_s1, 4  ;;  %s318_s15 = smov [#allocation5]   ;;  %s33_s14 = int_to_ptr.hbm [resolvable:$true] %s32_s14 }
   0x3   :  { %s34_s16 = sshll.u32 %s318_s15, 4  ;;  %s15_s19 = sshll.u32 %s456_s0, 4  ;;  %s35_s16 = int_to_ptr.vmem [resolvable:$true] %s34_s16  ;;  %s16_s19 = int_to_ptr.hbm [resolvable:$true] %s15_s19 }
   0x4   :  { %s319_s20 = smov 128   ;;  %s320_s21 = smov 8  }
   0x5   :  { %40 = dma.hbm_to_vmem [thread:$0]  %s33_s14, 640, %s35_s16, [#allocation6], %s319_s20, %s319_s20, %s320_s21  }
   0x6   :  { %s321_s22 = smov [#allocation2]   ;;  %s49_s26 = sshll.u32 %s458_s2, 4  ;;  %s50_s26 = int_to_ptr.hbm [resolvable:$true] %s49_s26 }
   0x7   :  { %s17_s23 = sshll.u32 %s321_s22, 4  ;;  %s322_s1 = smov [#allocation7]   ;;  %s18_s23 = int_to_ptr.vmem [resolvable:$true] %s17_s23 }
   0x8   :  { %23 = dma.hbm_to_vmem [thread:$0]  %s16_s19, 3840, %s18_s23, [#allocation3], %s319_s20, %s319_s20, %s320_s21  }
   0x9   :  { %s51_s27 = sshll.u32 %s322_s1, 4  ;;  %s52_s27 = int_to_ptr.vmem [resolvable:$true] %s51_s27 }
   0xa   :  { %57 = dma.hbm_to_vmem [thread:$0]  %s50_s26, 640, %s52_s27, [#allocation6], %s319_s20, %s319_s20, %s320_s21  }
   0xb   :  { %312 = dma.done.wait [#allocation3], 3840  }
   0xc   :  { %313 = vsyncadd [#allocation3], 4294963456 }
   0xd   :  { %314 = dma.done.wait [#allocation6], 1280  }
   0xe   :  { %315 = vsyncadd [#allocation6], 4294966016  ;;  %v353_v0 = vld [vmem:[#allocation7] sm:$0xff]  ;;  %v355_v1 = vld [vmem:[#allocation7 + $0x8] sm:$0xff]  ;;  %s323_s0 = smov [#allocation8]   ;;  %s198_s30 = sshll.u32 %s459_s3, 4  ;;  %s199_s30 = int_to_ptr.hbm [resolvable:$true] %s198_s30 }
   0xf   :  { %v357_v2 = vld [vmem:[#allocation7 + $0x10] sm:$0xff]  ;;  %v359_v3 = vld [vmem:[#allocation7 + $0x18] sm:$0xff]  ;;  %v361_v4 = vld [vmem:[#allocation7 + $0x20] sm:$0xff]  ;;  %vm89_vm0 = vcmp.eq.f32.partialorder %v353_v0, 1.0  ;;  %vm90_vm1 = vcmp.eq.f32.partialorder %v355_v1, 1.0  ;;  %vm94_vm2 = vcmp.eq.f32.partialorder %v353_v0, 0.0 }
  0x10   :  { %v366_v5 = vld [vmem:[#allocation5] sm:$0xff]  ;;  %v368_v6 = vld [vmem:[#allocation5 + $0x8] sm:$0xff]  ;;  %v370_v7 = vld [vmem:[#allocation5 + $0x10] sm:$0xff]  ;;  %vm95_vm3 = vcmp.eq.f32.partialorder %v355_v1, 0.0  ;;  %vm96_vm4 = vcmp.eq.f32.partialorder %v357_v2, 0.0  ;;  %vm97_vm5 = vcmp.eq.f32.partialorder %v359_v3, 0.0 }
  0x11   :  { %v99_v8 = vld [vmem:[#allocation2] sm:$0xff]  ;;  %v100_v9 = vld [vmem:[#allocation2 + $0x8] sm:$0xff]  ;;  %v101_v10 = vld [vmem:[#allocation2 + $0x10] sm:$0xff]  ;;  %vm91_vm6 = vcmp.eq.f32.partialorder %v357_v2, 1.0  ;;  %vm92_vm7 = vcmp.eq.f32.partialorder %v359_v3, 1.0  ;;  %vm98_vm8 = vcmp.eq.f32.partialorder %v361_v4, 0.0 }
  0x12   :  { %v375_v11 = vld [vmem:[#allocation5 + $0x18] sm:$0xff]  ;;  %v102_v12 = vld [vmem:[#allocation2 + $0x18] sm:$0xff]  ;;  %v103_v13 = vld [vmem:[#allocation2 + $0x20] sm:$0xff]  ;;  %vm93_vm9 = vcmp.eq.f32.partialorder %v361_v4, 1.0  ;;  %s196_s2 = sshll.u32 %s323_s0, 4  ;;  %s197_s2 = int_to_ptr.vmem [resolvable:$true] %s196_s2 }
  0x13   :  { %v105_v14 = vld [vmem:[#allocation2 + $0x78] sm:$0xff]  ;;  %v106_v15 = vld [vmem:[#allocation2 + $0x80] sm:$0xff]  ;;  %v107_v16 = vld [vmem:[#allocation2 + $0x88] sm:$0xff] }
  0x14   :  { %v108_v17 = vld [vmem:[#allocation2 + $0x90] sm:$0xff]  ;;  %v110_v18 = vsel %vm94_vm2, %v105_v14, 0.0  ;;  %v109_v20 = vld [vmem:[#allocation2 + $0x98] sm:$0xff]  ;;  %v111_v21 = vsel %vm95_vm3, %v106_v15, 0.0  ;;  %v112_v22 = vsel %vm96_vm4, %v107_v16, 0.0  ;;  %v121_v25 = vld [vmem:[#allocation2 + $0x28] sm:$0xff] }
  0x15   :  { %v383_v19 = vld [vmem:[#allocation5 + $0x20] sm:$0xff]  ;;  %v113_v23 = vsel %vm97_vm5, %v108_v17, 0.0  ;;  %v115_v24 = vsel %vm89_vm0, %v99_v8, %v110_v18  ;;  %v114_v27 = vsel %vm98_vm8, %v109_v20, 0.0  ;;  %v116_v28 = vsel %vm90_vm1, %v100_v9, %v111_v21  ;;  %v123_v31 = vld [vmem:[#allocation2 + $0x38] sm:$0xff]  ;;  %v124_v32 = vld [vmem:[#allocation2 + $0x40] sm:$0xff] }
  0x16   :  { %v122_v26 = vld [vmem:[#allocation2 + $0x30] sm:$0xff]  ;;  %v117_v29 = vsel %vm91_vm6, %v101_v10, %v112_v22  ;;  %v118_v30 = vsel %vm92_vm7, %v102_v12, %v113_v23  ;;  %v125_v33 = vld [vmem:[#allocation2 + $0x48] sm:$0xff]  ;;  %v119_v34 = vsel %vm93_vm9, %v103_v13, %v114_v27  ;;  %v127_v35 = vld [vmem:[#allocation2 + $0xa0] sm:$0xff]  ;;  %v164_v38 = vmul.f32 %v115_v24, %v366_v5 }
  0x17   :  { %v128_v36 = vld [vmem:[#allocation2 + $0xa8] sm:$0xff]  ;;  %v129_v37 = vld [vmem:[#allocation2 + $0xb0] sm:$0xff]  ;;  %v165_v39 = vmul.f32 %v116_v28, %v368_v6  ;;  %v166_v40 = vmul.f32 %v117_v29, %v370_v7  ;;  %v130_v41 = vld [vmem:[#allocation2 + $0xb8] sm:$0xff]  ;;  %v132_v43 = vsel %vm94_vm2, %v127_v35, 0.0  ;;  %v167_v46 = vmul.f32 %v118_v30, %v375_v11 }
  0x18   :  { %v131_v42 = vld [vmem:[#allocation2 + $0xc0] sm:$0xff]  ;;  %v133_v44 = vsel %vm95_vm3, %v128_v36, 0.0  ;;  %v134_v45 = vsel %vm96_vm4, %v129_v37, 0.0  ;;  %v135_v47 = vsel %vm97_vm5, %v130_v41, 0.0  ;;  %v137_v49 = vsel %vm89_vm0, %v121_v25, %v132_v43  ;;  %v143_v51 = vld [vmem:[#allocation2 + $0x50] sm:$0xff]  ;;  %v144_v55 = vld [vmem:[#allocation2 + $0x58] sm:$0xff] }
  0x19   :  { %v136_v48 = vsel %vm98_vm8, %v131_v42, 0.0  ;;  %v138_v50 = vsel %vm90_vm1, %v122_v26, %v133_v44  ;;  %v139_v52 = vsel %vm91_vm6, %v123_v31, %v134_v45  ;;  %v140_v53 = vsel %vm92_vm7, %v124_v32, %v135_v47  ;;  %v149_v56 = vld [vmem:[#allocation2 + $0xc8] sm:$0xff]  ;;  %v150_v57 = vld [vmem:[#allocation2 + $0xd0] sm:$0xff]  ;;  %v151_v59 = vld [vmem:[#allocation2 + $0xd8] sm:$0xff] }
  0x1a   :  { %v141_v54 = vsel %vm93_vm9, %v125_v33, %v136_v48  ;;  %v168_v58 = vmul.f32 %v119_v34, %v383_v19  ;;  %v152_v60 = vld [vmem:[#allocation2 + $0xe0] sm:$0xff]  ;;  %v154_v61 = vsel %vm94_vm2, %v149_v56, 0.0  ;;  %v155_v62 = vsel %vm95_vm3, %v150_v57, 0.0  ;;  %v153_v10 = vld [vmem:[#allocation2 + $0xe8] sm:$0xff]  ;;  %v147_v22 = vld [vmem:[#allocation2 + $0x70] sm:$0xff] }
  0x1b   :  { %v169_v63 = vadd.f32 %v164_v38, %v137_v49  ;;  %v170_v8 = vadd.f32 %v165_v39, %v138_v50  ;;  %v145_v9 = vld [vmem:[#allocation2 + $0x60] sm:$0xff]  ;;  %v156_v12 = vsel %vm96_vm4, %v151_v59, 0.0  ;;  %v146_v13 = vld [vmem:[#allocation2 + $0x68] sm:$0xff]  ;;  %v157_v14 = vsel %vm97_vm5, %v152_v60, 0.0 }
  0x1c   :  { %v159_v15 = vsel %vm89_vm0, %v143_v51, %v154_v61  ;;  %v160_v16 = vsel %vm90_vm1, %v144_v55, %v155_v62  ;;  %v171_v17 = vadd.f32 %v166_v40, %v139_v52  ;;  %v172_v18 = vadd.f32 %v167_v46, %v140_v53 }
  0x1d   :  { %v173_v20 = vadd.f32 %v168_v58, %v141_v54  ;;  %v174_v21 = vmul.f32 %v169_v63, %v366_v5  ;;  %v158_v23 = vsel %vm98_vm8, %v153_v10, 0.0  ;;  %v161_v24 = vsel %vm91_vm6, %v145_v9, %v156_v12 }
  0x1e   :  { %v175_v25 = vmul.f32 %v170_v8, %v368_v6  ;;  %v162_v0 = vsel %vm92_vm7, %v146_v13, %v157_v14  ;;  %v176_v1 = vmul.f32 %v171_v17, %v370_v7  ;;  %v177_v26 = vmul.f32 %v172_v18, %v375_v11 }
  0x1f   :  { %v179_v27 = vadd.f32 %v174_v21, %v159_v15  ;;  %v178_v28 = vmul.f32 %v173_v20, %v383_v19  ;;  %v163_v29 = vsel %vm93_vm9, %v147_v22, %v158_v23 }
  0x20   :  { %v180_v5 = vadd.f32 %v175_v25, %v160_v16  ;;  %v181_v30 = vadd.f32 %v176_v1, %v161_v24  ;;  %v182_v31 = vadd.f32 %v177_v26, %v162_v0 }
  0x21   :  { %v183_v32 = vadd.f32 %v178_v28, %v163_v29 }
  0x22   :  { %v185_v2 = vadd.f32 %v180_v5, %v179_v27 }
  0x24   :  { %v186_v33 = vadd.f32 %v185_v2, %v181_v30 }
  0x26   :  { %v187_v6 = vadd.f32 %v186_v33, %v182_v31 }
  0x28   :  { %v188_v3 = vadd.f32 %v187_v6, %v183_v32 }
  0x2a   :  { %190 = vst [vmem:[#allocation8] sm:$0xff] %v188_v3 }
  0x2b   :  { %201 = dma.vmem_to_hbm [thread:$0]  %s197_s2, 128, %s199_s30, [#allocation4]  }
  0x2c   :  { %316 = dma.done.wait [#allocation4], 128  }
  0x2d   :  { %317 = vsyncadd [#allocation4], 4294967168 }
  0x2e   :  { %206 = vsyncpa [#allocation3], 1 }
  0x2f   :  { %207 = vsyncpa [#allocation6], 1 }
  0x30   :  { %208 = vsyncpa [#allocation4], 1 }

</bundles_post_ra>
